<compile_context>
chip_gen: v7x
topology: tpu7x:2x2x1
jax: 0.10.0
libtpu: 0.0.40
codegen_flags: <defaults>
</compile_context>

<pallas_src>
import jax
import jax.numpy as jnp
from jax.experimental import pallas as pl
from jax.experimental.pallas import tpu as pltpu

BITS = 8
QMAX = float(2 ** (BITS - 1) - 1)   # 127 for 8-bit symmetric quantization
LANE = 128                          # TPU vreg lane width (hidden axis padded to this)
MAX_TILE_B = 512                    # batch tile once B grows; tiny VMEM footprint


# ------------------------------ kernel helpers ------------------------------ #

def _mxu_weight_dtype():
    """int8 on v5e/v6e (native integer MXU path); bf16 elsewhere (v7x has no int MXU)."""
    try:
        kind = jax.devices()[0].device_kind.lower()
    except Exception:
        return jnp.bfloat16
    if "v5" in kind or "v6" in kind:
        return jnp.int8
    return jnp.bfloat16


def _mxu_dot(q, w):
    """MXU matmul of integer q-levels (q is f32 integer levels in [-127, 127])."""
    if w.dtype == jnp.int8:
        acc = jnp.dot(q.astype(jnp.int8), w, preferred_element_type=jnp.int32)
        return acc.astype(jnp.float32)
    return jnp.dot(q.astype(jnp.bfloat16), w, preferred_element_type=jnp.float32)


def _fused_quant_mlp_kernel(x_ref, inq_ref, w1_ref, s1_ref, b1_ref,
                            w2_ref, s2_ref, b2_ref, oscale_ref, o_ref):
    """QuantIdentity -> QuantLinear -> QuantReLU -> QuantLinear -> QuantReLU,
    fully fused.  Static calibrated activation scales are folded into the
    per-channel vectors, so there are no in-kernel reductions or divides and
    intermediates never leave vregs."""
    x = x_ref[...].astype(jnp.float32)

    # QuantIdentity: q0 = clip(round(x / a0));  inq = 1/a0 pre-broadcast per lane.
    q0 = jnp.clip(jnp.round(x * inq_ref[...]), -QMAX, QMAX)

    # QuantLinear 1 + QuantReLU, with 1/a1 folded into scale & bias:
    #   q1 = clip(round(relu((q0 @ W1q) * (a0*ws1/a1) + b1/a1)))
    y1 = _mxu_dot(q0, w1_ref[...]) * s1_ref[...] + b1_ref[...]
    q1 = jnp.clip(jnp.round(jnp.maximum(y1, 0.0)), -QMAX, QMAX)

    # QuantLinear 2 + final QuantReLU (1/a2 folded the same way).
    y2 = _mxu_dot(q1, w2_ref[...]) * s2_ref[...] + b2_ref[...]
    q2 = jnp.clip(jnp.round(jnp.maximum(y2, 0.0)), -QMAX, QMAX)

    # Dequantize with a2 (pre-broadcast per output lane); direct (B, out_f) store.
    o_ref[...] = (q2 * oscale_ref[...]).astype(o_ref.dtype)


# ------------------------------- host wrappers ------------------------------ #

def fused_quant_mlp(x, kernel_params, out_f):
    """(B, in_f) -> (B, out_f) via a single fused, batch-tiled pallas_call.
    No host-side pad / cast / slice ops around the kernel."""
    inq, w1, s1, b1, w2, s2, b2, oscale = kernel_params
    B, in_f = x.shape
    tile_b = B if B <= MAX_TILE_B else MAX_TILE_B
    const = lambda i: (0, 0)   # weights/scales/bias: same block every step -> stay resident
    return pl.pallas_call(
        _fused_quant_mlp_kernel,
        out_shape=jax.ShapeDtypeStruct((B, out_f), jnp.float32),
        grid=(pl.cdiv(B, tile_b),),
        in_specs=[
            pl.BlockSpec((tile_b, in_f), lambda i: (i, 0)),   # streamed activations
            pl.BlockSpec((1, in_f), const),                   # 1/a0 per input lane
            pl.BlockSpec((in_f, LANE), const),                # W1 q-levels (in, out_pad)
            pl.BlockSpec((1, LANE), const),                   # a0*ws1/a1
            pl.BlockSpec((1, LANE), const),                   # b1/a1
            pl.BlockSpec((LANE, out_f), const),               # W2 q-levels (hid_pad, out)
            pl.BlockSpec((1, out_f), const),                  # a1*ws2/a2
            pl.BlockSpec((1, out_f), const),                  # b2/a2
            pl.BlockSpec((1, out_f), const),                  # a2 (final dequant)
        ],
        out_specs=pl.BlockSpec((tile_b, out_f), lambda i: (i, 0)),
        compiler_params=pltpu.CompilerParams(
            dimension_semantics=("parallel",)),   # batch tiles shard across v7x's 2 TCs
    )(x, inq, w1, s1, b1, w2, s2, b2, oscale)


def _fake_quant_weight_qs(w):
    """Per-output-channel symmetric 8-bit weight quant -> (q levels, scale)."""
    scale = jnp.maximum(jnp.max(jnp.abs(w), axis=1, keepdims=True) / QMAX, 1e-8)
    q = jnp.clip(jnp.round(w / scale), -QMAX, QMAX)
    return q, scale                                   # q:(out,in), scale:(out,1)


def _pad_to(a, shape):
    return jnp.pad(a, [(0, t - s) for s, t in zip(a.shape, shape)])


# ----------------------------- QuantModule model ---------------------------- #

class QuantMLP:
    """Concrete QuantModule: ordered `features` chain + sequential forward loop.
    The whole quantized chain executes as one fused Pallas kernel."""

    def __init__(self, key, in_f=32, hidden=32, out_f=16):
        k1, k2, k3, k4 = jax.random.split(key, 4)
        w1 = jax.random.normal(k1, (hidden, in_f), jnp.float32) * 0.1
        b1 = jax.random.normal(k2, (hidden,), jnp.float32) * 0.01
        w2 = jax.random.normal(k3, (out_f, hidden), jnp.float32) * 0.1
        b2 = jax.random.normal(k4, (out_f,), jnp.float32) * 0.01
        self.in_f, self.hidden, self.out_f = in_f, hidden, out_f

        # Per-channel 8-bit weight fake-quant, kept as (q levels, scale).
        q1, sc1 = _fake_quant_weight_qs(w1)
        q2, sc2 = _fake_quant_weight_qs(w2)

        mxu_dtype = _mxu_weight_dtype()
        # Pre-transposed (in, out) q-levels.  Only the hidden axis is padded to
        # 128 lanes; input K stays 32, output stays out_f.  int8 levels on
        # v5e/v6e, bf16 (exact for |q|<=127) elsewhere.
        self._w1p = _pad_to(q1.T, (in_f, LANE)).astype(mxu_dtype)
        self._w2p = _pad_to(q2.T, (LANE, out_f)).astype(mxu_dtype)
        self._ws1 = _pad_to(sc1.reshape(1, hidden), (1, LANE)).astype(jnp.float32)
        self._ws2 = sc2.reshape(1, out_f).astype(jnp.float32)
        self._b1 = _pad_to(b1.reshape(1, hidden), (1, LANE)).astype(jnp.float32)
        self._b2 = b2.reshape(1, out_f).astype(jnp.float32)

        # Dequantized weights kept only for the host-side calibration pass.
        self._w1_dq = (q1 * sc1).astype(jnp.float32)
        self._w2_dq = (q2 * sc2).astype(jnp.float32)
        self._b1_raw = b1
        self._b2_raw = b2

        self._kernel_params = None   # filled by calibrate()

        # self.features analogue: the fused quantized chain
        # (QuantIdentity -> QuantLinear -> QuantReLU -> QuantLinear -> QuantReLU).
        self.features = [lambda x: fused_quant_mlp(x, self._kernel_params, self.out_f)]

    def calibrate(self, x_calib):
        """Host-side calibration pass (mirrors QuantModule.calibrate / stats
        collection): per-tensor abs-max activation scales from a calibration
        batch, then folded into the kernel's per-channel epilogue vectors."""
        x = x_calib.astype(jnp.float32)
        a0 = jnp.maximum(jnp.max(jnp.abs(x)) / QMAX, 1e-8)
        xq = jnp.clip(jnp.round(x / a0), -QMAX, QMAX) * a0
        r1 = jnp.maximum(xq @ self._w1_dq.T + self._b1_raw, 0.0)
        a1 = jnp.maximum(jnp.max(jnp.abs(r1)) / QMAX, 1e-8)
        r1q = jnp.clip(jnp.round(r1 / a1), -QMAX, QMAX) * a1
        r2 = jnp.maximum(r1q @ self._w2_dq.T + self._b2_raw, 0.0)
        a2 = jnp.maximum(jnp.max(jnp.abs(r2)) / QMAX, 1e-8)

        inq = jnp.broadcast_to(1.0 / a0, (1, self.in_f)).astype(jnp.float32)
        s1 = (self._ws1 * (a0 / a1)).astype(jnp.float32)
        b1 = (self._b1 / a1).astype(jnp.float32)
        s2 = (self._ws2 * (a1 / a2)).astype(jnp.float32)
        b2 = (self._b2 / a2).astype(jnp.float32)
        oscale = jnp.broadcast_to(a2, (1, self.out_f)).astype(jnp.float32)
        self._kernel_params = (inq, self._w1p, s1, b1, self._w2p, s2, b2, oscale)
        return a0, a1, a2

    def forward_step(self, x, idx=0):
        # Mirrors QuantModule.forward_step: returns (x, module, x_next).
        if self._kernel_params is None:
            self.calibrate(x)        # auto-calibrate on the first batch seen
        if idx >= len(self.features):
            return x, None, None
        module = self.features[idx]
        return x, module, module(x)

    def forward(self, x):
        # Mirrors QuantModule.forward: loop until forward_step yields None.
        idx = 0
        x_next = x
        while x_next is not None:
            x = x_next
            _, _, x_next = self.forward_step(x, idx)
            idx += 1
        return x


# ----------------------------------- main ----------------------------------- #

if __name__ == "__main__":
    key = jax.random.PRNGKey(0)
    k_model, k_input = jax.random.split(key)

    model = QuantMLP(k_model, in_f=32, hidden=32, out_f=16)
    x = jax.random.normal(k_input, (8, 32), jnp.float32)   # (batch, features)

    model.calibrate(x)              # static activation scales (Brevitas-style eval)
    out = model.forward(x)
    out = jax.block_until_ready(out)

    assert out.shape == (8, 16) and out.dtype == jnp.float32
    assert bool(jnp.all(jnp.isfinite(out)))
    print("KERNEL_OK")
</pallas_src>

<mosaic_0001>
module attributes {stable_mosaic.version = 11 : i64} {
  func.func @_fused_quant_mlp_kernel(%arg0: i32, %arg1: memref<8x32xf32, #tpu.memory_space<vmem>>, %arg2: memref<1x32xf32, #tpu.memory_space<vmem>>, %arg3: memref<32x128xbf16, #tpu.memory_space<vmem>>, %arg4: memref<1x128xf32, #tpu.memory_space<vmem>>, %arg5: memref<1x128xf32, #tpu.memory_space<vmem>>, %arg6: memref<128x16xbf16, #tpu.memory_space<vmem>>, %arg7: memref<1x16xf32, #tpu.memory_space<vmem>>, %arg8: memref<1x16xf32, #tpu.memory_space<vmem>>, %arg9: memref<1x16xf32, #tpu.memory_space<vmem>>, %arg10: memref<8x16xf32, #tpu.memory_space<vmem>>) attributes {dimension_semantics = [#tpu.dimension_semantics<parallel>], iteration_bounds = array<i64: 1>, scalar_prefetch = 0 : i64, scratch_operands = 0 : i64, tpu.core_type = #tpu.core_type<tc>, window_params = [{transform_indices = @transform_0, window_bounds = array<i64: 8, 32>}, {pipeline_mode = #tpu.pipeline_mode<synchronous>, transform_indices = @transform_1, window_bounds = array<i64: 1, 32>}, {pipeline_mode = #tpu.pipeline_mode<synchronous>, transform_indices = @transform_2, window_bounds = array<i64: 32, 128>}, {pipeline_mode = #tpu.pipeline_mode<synchronous>, transform_indices = @transform_3, window_bounds = array<i64: 1, 128>}, {pipeline_mode = #tpu.pipeline_mode<synchronous>, transform_indices = @transform_4, window_bounds = array<i64: 1, 128>}, {pipeline_mode = #tpu.pipeline_mode<synchronous>, transform_indices = @transform_5, window_bounds = array<i64: 128, 16>}, {pipeline_mode = #tpu.pipeline_mode<synchronous>, transform_indices = @transform_6, window_bounds = array<i64: 1, 16>}, {pipeline_mode = #tpu.pipeline_mode<synchronous>, transform_indices = @transform_7, window_bounds = array<i64: 1, 16>}, {pipeline_mode = #tpu.pipeline_mode<synchronous>, transform_indices = @transform_8, window_bounds = array<i64: 1, 16>}, {transform_indices = @transform_9, window_bounds = array<i64: 8, 16>}]} {
    %c0 = arith.constant 0 : index
    %c0_0 = arith.constant 0 : index
    %0 = vector.load %arg1[%c0, %c0_0] : memref<8x32xf32, #tpu.memory_space<vmem>>, vector<8x32xf32>
    %c0_1 = arith.constant 0 : index
    %c0_2 = arith.constant 0 : index
    %1 = vector.load %arg2[%c0_1, %c0_2] : memref<1x32xf32, #tpu.memory_space<vmem>>, vector<1x32xf32>
    %2 = vector.broadcast %1 : vector<1x32xf32> to vector<8x32xf32>
    %3 = arith.mulf %0, %2 : vector<8x32xf32>
    %4 = math.roundeven %3 : vector<8x32xf32>
    %cst = arith.constant -1.270000e+02 : f32
    %cst_3 = arith.constant 1.270000e+02 : f32
    %5 = vector.broadcast %cst : f32 to vector<8x32xf32>
    %6 = arith.maximumf %5, %4 : vector<8x32xf32>
    %7 = vector.broadcast %cst_3 : f32 to vector<8x32xf32>
    %8 = arith.minimumf %7, %6 : vector<8x32xf32>
    %c0_4 = arith.constant 0 : index
    %c0_5 = arith.constant 0 : index
    %9 = vector.load %arg3[%c0_4, %c0_5] : memref<32x128xbf16, #tpu.memory_space<vmem>>, vector<32x128xbf16>
    %10 = arith.truncf %8 : vector<8x32xf32> to vector<8x32xbf16>
    %cst_6 = arith.constant dense<0.000000e+00> : vector<8x128xf32>
    %11 = tpu.matmul %10, %9, %cst_6 {dimension_numbers = #tpu.dot_dimension_numbers<[1], [0], [0], [1], [0, 0, 1, 1], [], []>} : vector<8x32xbf16>, vector<32x128xbf16>, vector<8x128xf32> -> vector<8x128xf32>
    %c0_7 = arith.constant 0 : index
    %c0_8 = arith.constant 0 : index
    %12 = vector.load %arg4[%c0_7, %c0_8] : memref<1x128xf32, #tpu.memory_space<vmem>>, vector<1x128xf32>
    %13 = vector.broadcast %12 : vector<1x128xf32> to vector<8x128xf32>
    %14 = arith.mulf %11, %13 : vector<8x128xf32>
    %c0_9 = arith.constant 0 : index
    %c0_10 = arith.constant 0 : index
    %15 = vector.load %arg5[%c0_9, %c0_10] : memref<1x128xf32, #tpu.memory_space<vmem>>, vector<1x128xf32>
    %16 = vector.broadcast %15 : vector<1x128xf32> to vector<8x128xf32>
    %17 = arith.addf %14, %16 : vector<8x128xf32>
    %cst_11 = arith.constant 0.000000e+00 : f32
    %18 = vector.broadcast %cst_11 : f32 to vector<8x128xf32>
    %19 = arith.maximumf %17, %18 : vector<8x128xf32>
    %20 = math.roundeven %19 : vector<8x128xf32>
    %cst_12 = arith.constant -1.270000e+02 : f32
    %cst_13 = arith.constant 1.270000e+02 : f32
    %21 = vector.broadcast %cst_12 : f32 to vector<8x128xf32>
    %22 = arith.maximumf %21, %20 : vector<8x128xf32>
    %23 = vector.broadcast %cst_13 : f32 to vector<8x128xf32>
    %24 = arith.minimumf %23, %22 : vector<8x128xf32>
    %c0_14 = arith.constant 0 : index
    %c0_15 = arith.constant 0 : index
    %25 = vector.load %arg6[%c0_14, %c0_15] : memref<128x16xbf16, #tpu.memory_space<vmem>>, vector<128x16xbf16>
    %26 = arith.truncf %24 : vector<8x128xf32> to vector<8x128xbf16>
    %cst_16 = arith.constant dense<0.000000e+00> : vector<8x16xf32>
    %27 = tpu.matmul %26, %25, %cst_16 {dimension_numbers = #tpu.dot_dimension_numbers<[1], [0], [0], [1], [0, 0, 1, 1], [], []>} : vector<8x128xbf16>, vector<128x16xbf16>, vector<8x16xf32> -> vector<8x16xf32>
    %c0_17 = arith.constant 0 : index
    %c0_18 = arith.constant 0 : index
    %28 = vector.load %arg7[%c0_17, %c0_18] : memref<1x16xf32, #tpu.memory_space<vmem>>, vector<1x16xf32>
    %29 = vector.broadcast %28 : vector<1x16xf32> to vector<8x16xf32>
    %30 = arith.mulf %27, %29 : vector<8x16xf32>
    %c0_19 = arith.constant 0 : index
    %c0_20 = arith.constant 0 : index
    %31 = vector.load %arg8[%c0_19, %c0_20] : memref<1x16xf32, #tpu.memory_space<vmem>>, vector<1x16xf32>
    %32 = vector.broadcast %31 : vector<1x16xf32> to vector<8x16xf32>
    %33 = arith.addf %30, %32 : vector<8x16xf32>
    %cst_21 = arith.constant 0.000000e+00 : f32
    %34 = vector.broadcast %cst_21 : f32 to vector<8x16xf32>
    %35 = arith.maximumf %33, %34 : vector<8x16xf32>
    %36 = math.roundeven %35 : vector<8x16xf32>
    %cst_22 = arith.constant -1.270000e+02 : f32
    %cst_23 = arith.constant 1.270000e+02 : f32
    %37 = vector.broadcast %cst_22 : f32 to vector<8x16xf32>
    %38 = arith.maximumf %37, %36 : vector<8x16xf32>
    %39 = vector.broadcast %cst_23 : f32 to vector<8x16xf32>
    %40 = arith.minimumf %39, %38 : vector<8x16xf32>
    %c0_24 = arith.constant 0 : index
    %c0_25 = arith.constant 0 : index
    %41 = vector.load %arg9[%c0_24, %c0_25] : memref<1x16xf32, #tpu.memory_space<vmem>>, vector<1x16xf32>
    %42 = vector.broadcast %41 : vector<1x16xf32> to vector<8x16xf32>
    %43 = arith.mulf %40, %42 : vector<8x16xf32>
    %c0_26 = arith.constant 0 : index
    %c0_27 = arith.constant 0 : index
    %44 = vector.load %arg10[%c0_26, %c0_27] : memref<8x16xf32, #tpu.memory_space<vmem>>, vector<8x16xf32>
    tpu.vector_store %arg10[%c0_26, %c0_27], %43 {strides = array<i32>} : memref<8x16xf32, #tpu.memory_space<vmem>>, vector<8x16xf32>,
    return
  }
  func.func @transform_0(%arg0: i32) -> (i32, i32) {
    %c0_i32 = arith.constant 0 : i32
    %c0_i32_0 = arith.constant 0 : i32
    return %arg0, %c0_i32 : i32, i32
  }
  func.func @transform_1(%arg0: i32) -> (i32, i32) {
    %c0_i32 = arith.constant 0 : i32
    %c0_i32_0 = arith.constant 0 : i32
    %c0_i32_1 = arith.constant 0 : i32
    return %c0_i32, %c0_i32_0 : i32, i32
  }
  func.func @transform_2(%arg0: i32) -> (i32, i32) {
    %c0_i32 = arith.constant 0 : i32
    %c0_i32_0 = arith.constant 0 : i32
    %c0_i32_1 = arith.constant 0 : i32
    return %c0_i32, %c0_i32_0 : i32, i32
  }
  func.func @transform_3(%arg0: i32) -> (i32, i32) {
    %c0_i32 = arith.constant 0 : i32
    %c0_i32_0 = arith.constant 0 : i32
    %c0_i32_1 = arith.constant 0 : i32
    return %c0_i32, %c0_i32_0 : i32, i32
  }
  func.func @transform_4(%arg0: i32) -> (i32, i32) {
    %c0_i32 = arith.constant 0 : i32
    %c0_i32_0 = arith.constant 0 : i32
    %c0_i32_1 = arith.constant 0 : i32
    return %c0_i32, %c0_i32_0 : i32, i32
  }
  func.func @transform_5(%arg0: i32) -> (i32, i32) {
    %c0_i32 = arith.constant 0 : i32
    %c0_i32_0 = arith.constant 0 : i32
    %c0_i32_1 = arith.constant 0 : i32
    return %c0_i32, %c0_i32_0 : i32, i32
  }
  func.func @transform_6(%arg0: i32) -> (i32, i32) {
    %c0_i32 = arith.constant 0 : i32
    %c0_i32_0 = arith.constant 0 : i32
    %c0_i32_1 = arith.constant 0 : i32
    return %c0_i32, %c0_i32_0 : i32, i32
  }
  func.func @transform_7(%arg0: i32) -> (i32, i32) {
    %c0_i32 = arith.constant 0 : i32
    %c0_i32_0 = arith.constant 0 : i32
    %c0_i32_1 = arith.constant 0 : i32
    return %c0_i32, %c0_i32_0 : i32, i32
  }
  func.func @transform_8(%arg0: i32) -> (i32, i32) {
    %c0_i32 = arith.constant 0 : i32
    %c0_i32_0 = arith.constant 0 : i32
    %c0_i32_1 = arith.constant 0 : i32
    return %c0_i32, %c0_i32_0 : i32, i32
  }
  func.func @transform_9(%arg0: i32) -> (i32, i32) {
    %c0_i32 = arith.constant 0 : i32
    %c0_i32_0 = arith.constant 0 : i32
    return %arg0, %c0_i32 : i32, i32
  }
}

</mosaic_0001>

<bundles_post_ra>
// kernel: tpu_custom_call.1
= control target key start
LH: loop header
LB: loop body
LE: loop exit
PB: predicated region body
PF: predicated region fallthrough
CT: control target
= control target key end

     0   :  { %v376_v1 = vmov 0.0   ;;  %vm377_vm0 = vmmov 0   ;;  %vm63_vm1 = vcmask 261120   ;;  %s492_s0 = inlined_call_operand.vmem [shape: f32[8,32], index: 0, kind: input, shape index: {}]   ;;  %s493_s1 = inlined_call_operand.vmem [shape: f32[1,32], index: 1, kind: input, shape index: {}]   ;;  %s494_s2 = inlined_call_operand.vmem [shape: bf16[32,128], index: 2, kind: input, shape index: {}]   ;;  %s495_s3 = inlined_call_operand.vmem [shape: f32[1,128], index: 3, kind: input, shape index: {}]   ;;  %s496_s4 = inlined_call_operand.vmem [shape: f32[1,128], index: 4, kind: input, shape index: {}]   ;;  %s497_s5 = inlined_call_operand.vmem [shape: bf16[128,16], index: 5, kind: input, shape index: {}]   ;;  %s498_s6 = inlined_call_operand.vmem [shape: f32[1,16], index: 6, kind: input, shape index: {}]   ;;  %s499_s7 = inlined_call_operand.vmem [shape: f32[1,16], index: 7, kind: input, shape index: {}]   ;;  %s500_s8 = inlined_call_operand.vmem [shape: f32[1,16], index: 8, kind: input, shape index: {}]   ;;  %s501_s9 = inlined_call_operand.hbm [shape: f32[8,16], index: 9, kind: output, shape index: {}]  }
   0x1   :  { %v342_v0 = vld [vmem:[%s494_s2] sm:$0xff]   ;;  %308 = vmatprep.subr.bf16.mxu0 %v376_v1  ;;  %v343_v2 = vld [vmem:[%s494_s2 + $0x8] sm:$0xff]   ;;  %316 = vmatprep.subr.bf16.mxu1 %v376_v1  ;;  %v346_v10 = vld [vmem:[%s497_s5 + $0x10] sm:$0xff]  }
   0x2   :  { %309 = vmatpush3.bf16.msra.mxu0 %v342_v0  ;;  %312 = vmatprep.mubr.msk.bf16.mxu0 %vm377_vm0, %v376_v1  ;;  %v34_v3 = vld [vmem:[%s492_s0] sm:$0xff]  ;;  %v345_v8 = vld [vmem:[%s497_s5 + $0x8] sm:$0xff]  }
   0x3   :  { %v276_v4 = vld [vmem:[%s493_s1] ss:$0 sm:$0xff]  ;;  %310 = vmatprep.subr.bf16.mxu0 %v376_v1  ;;  %332 = vmatprep.mubr.msk.bf16.mxu1 %vm377_vm0, %v376_v1 }
   0x4   :  { %v42_v5 = vmul.f32 %v276_v4, %v34_v3  ;;  %v344_v6 = vld [vmem:[%s497_s5] sm:$0xff]  }
   0x5   :  { %317 = vmatpush3.bf16.msra.mxu1 %v344_v6 }
   0x6   :  { %v336_v7 = vround.rtne.f32 %v42_v5  ;;  %311 = vmatpush3.bf16.msra.mxu0 %v343_v2  ;;  %318 = vmatprep.subr.bf16.mxu1 %v376_v1 }
   0x8   :  { %v277_v9 = vclamps-f32 %v336_v7, 127.0 }
   0x9   :  { %319 = vmatpush3.bf16.msra.mxu1 %v345_v8 }
   0xa   :  { %v50_v11 = vpack.c.bf16 %v277_v9, %v277_v9 }
   0xb   :  { %14 = vsyncpa [#allocation3], 0  ;;  %320 = vmatprep.subr.bf16.mxu1 %v376_v1  ;;  %v347_v12 = vld [vmem:[%s497_s5 + $0x18] sm:$0xff]   ;;  %v348_v13 = vld [vmem:[%s497_s5 + $0x20] sm:$0xff]   ;;  %s378_s16 = smov [#allocation2]   ;;  %vm260_vm2 = vcmask 130048  }
   0xc   :  { %313 = vmatmul.mubr.msk.bf16.vlgmr.msra.gmra.mrb[0].mxu0 %vm63_vm1, %v50_v11  ;;  %v349_v14 = vld [vmem:[%s497_s5 + $0x28] sm:$0xff]   ;;  %v350_v15 = vld [vmem:[%s497_s5 + $0x30] sm:$0xff]   ;;  %v351_v16 = vld [vmem:[%s497_s5 + $0x38] sm:$0xff]   ;;  %s268_s17 = sshll.u32 %s378_s16, 4  ;;  %s269_s17 = int_to_ptr.vmem [resolvable:$true] %s268_s17 }
   0xd   :  { %321 = vmatpush3.bf16.msra.mxu1 %v346_v10  ;;  %v281_v17 = vld [vmem:[%s495_s3] ss:$0 sm:$0xff]  ;;  %p357_p1 = scmp.lt.s32.totalorder %s269_s17, %s269_s17 }
   0xe   :  { %322 = vmatprep.subr.bf16.mxu1 %v376_v1  ;;  %v282_v19 = vld [vmem:[%s496_s4] ss:$0 sm:$0xff] }
   0xf   :  { %v292_v29 = vld [vmem:[%s498_s6] ss:$0 sm:$0xff]  ;;  %s352_s6 = scalar_lea.vmem %s269_s17, 128 }
  0x10   :  { %v293_v31 = vld [vmem:[%s499_s7] ss:$0 sm:$0xff]  ;;  %p353_p0 = scmp.ne.s32.totalorder %s269_s17, %s352_s6  ;;  %p358_p2 = scmp.lt.s32.totalorder %s352_s6, %s352_s6 }
  0x11   :  { %323 = vmatpush3.bf16.msra.mxu1 %v347_v12  ;;  %v295_v39 = vld [vmem:[%s500_s8] ss:$0 sm:$0xff] }
  0x12   :  { %324 = vmatprep.subr.bf16.mxu1 %v376_v1  ;;  %p359_p3 = por %p358_p2, %p357_p1 }
  0x14   :  { %p360_p4 = pnand %p359_p3, %p353_p0 }
  0x15   :  { %325 = vmatpush3.bf16.msra.mxu1 %v348_v13 }
  0x16   :  { %326 = vmatprep.subr.bf16.mxu1 %v376_v1 }
  0x19   :  { %327 = vmatpush3.bf16.msra.mxu1 %v349_v14 }
  0x1a   :  { %328 = vmatprep.subr.bf16.mxu1 %v376_v1 }
  0x1d   :  { %329 = vmatpush3.bf16.msra.mxu1 %v350_v15 }
  0x1e   :  { %330 = vmatprep.subr.bf16.mxu1 %v376_v1 }
  0x21   :  { %331 = vmatpush3.bf16.msra.mxu1 %v351_v16 }
  0xdf   :  { %v101_v18 = vpop.f32.mrb[0].mxu0 }
  0xe0   :  { %v114_v20 = vmul.f32 %v281_v17, %v101_v18  ;;  %v314_v21 = vpop.f32.mrb[1].mxu0 }
  0xe1   :  { %v104_v22 = vpop.f32.mrb[2].mxu0 }
  0xe2   :  { %v122_v23 = vadd.f32 %v282_v19, %v114_v20  ;;  %v315_v24 = vpop.f32.mrb[3].mxu0 }
  0xe4   :  { %v123_v25 = vmax.f32 %v122_v23, 0.0 }
  0xe6   :  { %v337_v26 = vround.rtne.f32 %v123_v25 }
  0xe8   :  { %v283_v27 = vclamps-f32 %v337_v26, 127.0 }
  0xea   :  { %v143_v28 = vpack.c.bf16 %v283_v27, %v283_v27 }
  0xec   :  { %333 = vmatmul.mubr.bf16.vlgmr.msra.gmra.mrb[0].mxu1 %v143_v28 }
 0x1bf   :  { %v226_v30 = vpop.f32.mrb[0].mxu1 }
 0x1c0   :  { %v239_v32 = vmul.f32 %v292_v29, %v226_v30  ;;  %v334_v33 = vpop.f32.mrb[1].mxu1 }
 0x1c1   :  { %v229_v34 = vpop.f32.mrb[2].mxu1 }
 0x1c2   :  { %v247_v35 = vadd.f32 %v293_v31, %v239_v32  ;;  %v335_v36 = vpop.f32.mrb[3].mxu1 }
 0x1c4   :  { %v248_v37 = vmax.f32 %v247_v35, 0.0 }
 0x1c6   :  { %v338_v38 = vround.rtne.f32 %v248_v37 }
 0x1c8   :  { %v294_v40 = vclamps-f32 %v338_v38, 127.0 }
 0x1ca   :  { %v259_v41 = vmul.f32 %v295_v39, %v294_v40 }
 0x1cc   :  { %261 = vst.msk [vmem:[#allocation2] sm:$0xff] %vm260_vm2, %v259_v41 }
 0x1cd   :  { %363 = shalt.err (!%p360_p4)
}
 0x1ce   :  { %s364_s2 = scalar_lea.hbm %s501_s9, 128 }
 0x1cf   :  { %p365_p5 = scmp.ne.s32.totalorder %s501_s9, %s364_s2  ;;  %p368_p6 = scmp.lt.u32.totalorder %s364_s2, %s501_s9 }
 0x1d1   :  { %p370_p7 = pnand %p368_p6, %p365_p5 }
 0x1d3   :  { %373 = shalt.err (!%p370_p7)
}
 0x1d4   :  { %271 = dma.vmem_to_hbm [thread:$0]  %s269_s17, 128, %s501_s9, [#allocation3]  }
 0x1d5   :  { %374 = dma.done.wait [#allocation3], 128  }
 0x1d6   :  { %375 = vsyncadd [#allocation3], 4294967168 }
 0x1d7   :  { %275 = vsyncpa [#allocation3], 1 }

</bundles_post_ra>
